<compile_context>
chip_gen: v5e
topology: v5e:2x2
jax: 0.10.0
libtpu: 0.0.40
codegen_flags: <defaults>
</compile_context>

<pallas_src>
import functools

import jax
import jax.numpy as jnp
from jax.experimental import pallas as pl
from jax.experimental.pallas import tpu as pltpu


def _round_up(v, m):
    return -(-v // m) * m


def _gnn_kernel(x_ref, w1_ref, w2_ref, out_ref, h_ref, *, nclass):
    # ---- layer 1: h = relu(x_aug @ W1_aug)  (b1 folded into W1_aug) -------
    h = jnp.dot(x_ref[...], w1_ref[...], preferred_element_type=jnp.float32)
    h = jnp.maximum(h, 0.0)
    h_ref[...] = h.astype(h_ref.dtype)        # gft_list[0] (padded, sliced later)

    # ---- layer 2: logits = h_aug @ W2_aug   (b2 folded via constant-1 lane)
    logits = jnp.dot(h.astype(w2_ref.dtype), w2_ref[...],
                     preferred_element_type=jnp.float32)

    # ---- output nonlinearity ----------------------------------------------
    if nclass == 1:
        out = jax.nn.sigmoid(logits)          # padded lanes sliced off outside
    else:
        # mask padded class lanes so they don't corrupt the normalizer
        col = jax.lax.broadcasted_iota(jnp.int32, logits.shape, 1)
        logits = jnp.where(col < nclass, logits, jnp.float32(-1e30))
        m = jnp.max(logits, axis=1, keepdims=True)
        shifted = logits - m
        lse = jnp.log(jnp.sum(jnp.exp(shifted), axis=1, keepdims=True))
        out = shifted - lse
    out_ref[...] = out.astype(out_ref.dtype)


def _pick_tile_n(n, nf_p, nh_p, nc_p, *, vmem_budget=24 << 20):
    """Largest node tile (multiple of 8, <=1024) fitting the VMEM budget.

    Budget: resident bf16 weights + double-buffered bf16 x tile + double-
    buffered f32 out/h tiles. Conservative enough for v7x's 64 MiB VMEM
    (32 MiB default scoped limit) as well as v5e/v6e.
    """
    weights_bytes = (nf_p * nh_p + nh_p * nc_p) * 2          # bf16 resident
    tn = min(1024, _round_up(max(n, 1), 8))
    while tn > 8:
        tile_bytes = 2 * (tn * nf_p * 2 + tn * (nh_p + nc_p) * 4)
        if weights_bytes + tile_bytes <= vmem_budget:
            break
        tn = max(8, _round_up(tn // 2, 8))
    return tn


def gnn_forward(x, adj, params, *, nclass):
    """Pallas-backed GNN forward (n_layer=2). Returns (out, [h])."""
    del adj  # adj is unused by GNN.forward in the reference module (n_layer=2)
    # TODO(synk): dropout is stored but never applied in the reference forward.
    w1, b1, w2, b2 = params
    n, nfeat = x.shape
    nhid = w1.shape[1]
    assert w1.shape == (nfeat, nhid)
    assert w2.shape == (nhid, nclass)
    b1 = jnp.reshape(b1, (nhid,))
    b2 = jnp.reshape(b2, (nclass,))

    cdt = jnp.bfloat16  # MXU compute dtype (f32 accumulation in-kernel)

    # lane-dense padded sizes: +1 feature column (ones -> carries b1),
    # +1 hidden lane (constant 1 -> carries b2), class axis padded to 128.
    nf_p = _round_up(nfeat + 1, 128)
    nh_p = _round_up(nhid + 1, 128)
    nc_p = _round_up(nclass, 128)

    tn = _pick_tile_n(n, nf_p, nh_p, nc_p)
    n_p = _round_up(max(n, 1), tn)

    # x_aug: [:, :nfeat]=x, [:, nfeat]=1 (bias column), rest zeros
    x_p = jnp.zeros((n_p, nf_p), cdt)
    x_p = x_p.at[:n, :nfeat].set(x.astype(cdt))
    x_p = x_p.at[:, nfeat].set(1.0)

    # W1_aug: [:nfeat,:nhid]=W1, [nfeat,:nhid]=b1, [nfeat,nhid]=1 (const-1 lane)
    w1_p = jnp.zeros((nf_p, nh_p), cdt)
    w1_p = w1_p.at[:nfeat, :nhid].set(w1.astype(cdt))
    w1_p = w1_p.at[nfeat, :nhid].set(b1.astype(cdt))
    w1_p = w1_p.at[nfeat, nhid].set(1.0)

    # W2_aug: [:nhid,:nclass]=W2, [nhid,:nclass]=b2
    w2_p = jnp.zeros((nh_p, nc_p), cdt)
    w2_p = w2_p.at[:nhid, :nclass].set(w2.astype(cdt))
    w2_p = w2_p.at[nhid, :nclass].set(b2.astype(cdt))

    kernel = functools.partial(_gnn_kernel, nclass=nclass)

    out_p, h_p = pl.pallas_call(
        kernel,
        out_shape=(
            jax.ShapeDtypeStruct((n_p, nc_p), jnp.float32),  # log_softmax out
            jax.ShapeDtypeStruct((n_p, nh_p), jnp.float32),  # gft_list[0]
        ),
        grid=(n_p // tn,),
        in_specs=[
            pl.BlockSpec((tn, nf_p), lambda i: (i, 0)),      # x tile (pipelined)
            pl.BlockSpec((nf_p, nh_p), lambda i: (0, 0)),    # W1 resident
            pl.BlockSpec((nh_p, nc_p), lambda i: (0, 0)),    # W2 resident
        ],
        out_specs=(
            pl.BlockSpec((tn, nc_p), lambda i: (i, 0)),
            pl.BlockSpec((tn, nh_p), lambda i: (i, 0)),
        ),
        compiler_params=pltpu.CompilerParams(
            dimension_semantics=("parallel",),
            vmem_limit_bytes=64 << 20,
        ),
    )(x_p, w1_p, w2_p)

    out = out_p[:n, :nclass]
    h = h_p[:n, :nhid]
    return out, [h]


def init_params(key, nfeat, nhid, nclass):
    """Deterministic synthetic parameters for gc1 / gc2 (GraphLinear ~ Linear)."""
    k1, k2, k3, k4 = jax.random.split(key, 4)
    w1 = jax.random.normal(k1, (nfeat, nhid), jnp.float32) * 0.1
    b1 = jax.random.normal(k2, (1, nhid), jnp.float32) * 0.01
    w2 = jax.random.normal(k3, (nhid, nclass), jnp.float32) * 0.1
    b2 = jax.random.normal(k4, (1, nclass), jnp.float32) * 0.01
    return w1, b1, w2, b2


if __name__ == "__main__":
    # Small, module-consistent shapes: 8 graph nodes, nfeat=32, nhid=32, nclass=4.
    N, NFEAT, NHID, NCLASS = 8, 32, 32, 4

    key = jax.random.PRNGKey(0)
    kx, kadj, kp = jax.random.split(key, 3)
    x = jax.random.normal(kx, (N, NFEAT), jnp.float32)
    adj = jax.random.uniform(kadj, (N, N), jnp.float32)  # accepted, unused
    params = init_params(kp, NFEAT, NHID, NCLASS)

    out, gft_list = gnn_forward(x, adj, params, nclass=NCLASS)
    jax.block_until_ready(out)
    jax.block_until_ready(gft_list[0])

    # pure-JAX reference (f32) for sanity; tolerance accounts for bf16 MXU feed
    w1, b1, w2, b2 = params
    h_ref = jnp.maximum(x @ w1 + b1, 0.0)
    out_ref = jax.nn.log_softmax(h_ref @ w2 + b2, axis=1)

    probs_sum = jnp.sum(jnp.exp(out), axis=1)
    assert out.shape == (N, NCLASS)
    assert gft_list[0].shape == (N, NHID)
    assert bool(jnp.all(jnp.abs(probs_sum - 1.0) < 1e-4))
    assert bool(jnp.all(jnp.abs(gft_list[0] - h_ref) < 5e-2))
    assert bool(jnp.all(jnp.abs(out - out_ref) < 5e-2))

    print("KERNEL_OK")
</pallas_src>

<mosaic_0001>
module attributes {stable_mosaic.version = 11 : i64} {
  func.func @_gnn_kernel(%arg0: i32, %arg1: memref<8x128xbf16, #tpu.memory_space<vmem>>, %arg2: memref<128x128xbf16, #tpu.memory_space<vmem>>, %arg3: memref<128x128xbf16, #tpu.memory_space<vmem>>, %arg4: memref<8x128xf32, #tpu.memory_space<vmem>>, %arg5: memref<8x128xf32, #tpu.memory_space<vmem>>) attributes {dimension_semantics = [#tpu.dimension_semantics<parallel>], iteration_bounds = array<i64: 1>, scalar_prefetch = 0 : i64, scratch_operands = 0 : i64, tpu.core_type = #tpu.core_type<tc>, window_params = [{transform_indices = @transform_0, window_bounds = array<i64: 8, 128>}, {pipeline_mode = #tpu.pipeline_mode<synchronous>, transform_indices = @transform_1, window_bounds = array<i64: 128, 128>}, {pipeline_mode = #tpu.pipeline_mode<synchronous>, transform_indices = @transform_2, window_bounds = array<i64: 128, 128>}, {transform_indices = @transform_3, window_bounds = array<i64: 8, 128>}, {transform_indices = @transform_4, window_bounds = array<i64: 8, 128>}]} {
    %c0 = arith.constant 0 : index
    %c0_0 = arith.constant 0 : index
    %0 = vector.load %arg1[%c0, %c0_0] : memref<8x128xbf16, #tpu.memory_space<vmem>>, vector<8x128xbf16>
    %c0_1 = arith.constant 0 : index
    %c0_2 = arith.constant 0 : index
    %1 = vector.load %arg2[%c0_1, %c0_2] : memref<128x128xbf16, #tpu.memory_space<vmem>>, vector<128x128xbf16>
    %cst = arith.constant dense<0.000000e+00> : vector<8x128xf32>
    %2 = tpu.matmul %0, %1, %cst {dimension_numbers = #tpu.dot_dimension_numbers<[1], [0], [0], [1], [0, 0, 1, 1], [], []>} : vector<8x128xbf16>, vector<128x128xbf16>, vector<8x128xf32> -> vector<8x128xf32>
    %cst_3 = arith.constant 0.000000e+00 : f32
    %3 = vector.broadcast %cst_3 : f32 to vector<8x128xf32>
    %4 = arith.maximumf %2, %3 : vector<8x128xf32>
    %c0_4 = arith.constant 0 : index
    %c0_5 = arith.constant 0 : index
    %5 = vector.load %arg5[%c0_4, %c0_5] : memref<8x128xf32, #tpu.memory_space<vmem>>, vector<8x128xf32>
    tpu.vector_store %arg5[%c0_4, %c0_5], %4 {strides = array<i32>} : memref<8x128xf32, #tpu.memory_space<vmem>>, vector<8x128xf32>,
    %6 = arith.truncf %4 : vector<8x128xf32> to vector<8x128xbf16>
    %c0_6 = arith.constant 0 : index
    %c0_7 = arith.constant 0 : index
    %7 = vector.load %arg3[%c0_6, %c0_7] : memref<128x128xbf16, #tpu.memory_space<vmem>>, vector<128x128xbf16>
    %cst_8 = arith.constant dense<0.000000e+00> : vector<8x128xf32>
    %8 = tpu.matmul %6, %7, %cst_8 {dimension_numbers = #tpu.dot_dimension_numbers<[1], [0], [0], [1], [0, 0, 1, 1], [], []>} : vector<8x128xbf16>, vector<128x128xbf16>, vector<8x128xf32> -> vector<8x128xf32>
    %9 = tpu.iota {dimensions = array<i32: 1>} : vector<8x128xi32>
    %c4_i32 = arith.constant 4 : i32
    %10 = vector.broadcast %c4_i32 : i32 to vector<8x128xi32>
    %11 = arith.cmpi slt, %9, %10 : vector<8x128xi32>
    %cst_9 = arith.constant -1.000000e+30 : f32
    %12 = vector.broadcast %cst_9 : f32 to vector<8x128xf32>
    %13 = arith.select %11, %8, %12 : vector<8x128xi1>, vector<8x128xf32>
    %cst_10 = arith.constant dense<0xFF800000> : vector<8xf32>
    %14 = vector.multi_reduction <maximumf>, %13, %cst_10 [1] : vector<8x128xf32> to vector<8xf32>
    %15 = vector.shape_cast %14 : vector<8xf32> to vector<8x1xf32>
    %16 = vector.broadcast %15 : vector<8x1xf32> to vector<8x128xf32>
    %17 = arith.subf %13, %16 : vector<8x128xf32>
    %18 = math.exp %17 : vector<8x128xf32>
    %cst_11 = arith.constant dense<0.000000e+00> : vector<8xf32>
    %19 = vector.multi_reduction <add>, %18, %cst_11 [1] : vector<8x128xf32> to vector<8xf32>
    %20 = vector.shape_cast %19 : vector<8xf32> to vector<8x1xf32>
    %21 = math.log %20 : vector<8x1xf32>
    %22 = vector.broadcast %21 : vector<8x1xf32> to vector<8x128xf32>
    %23 = arith.subf %17, %22 : vector<8x128xf32>
    %c0_12 = arith.constant 0 : index
    %c0_13 = arith.constant 0 : index
    %24 = vector.load %arg4[%c0_12, %c0_13] : memref<8x128xf32, #tpu.memory_space<vmem>>, vector<8x128xf32>
    tpu.vector_store %arg4[%c0_12, %c0_13], %23 {strides = array<i32>} : memref<8x128xf32, #tpu.memory_space<vmem>>, vector<8x128xf32>,
    return
  }
  func.func @transform_0(%arg0: i32) -> (i32, i32) {
    %c0_i32 = arith.constant 0 : i32
    %c0_i32_0 = arith.constant 0 : i32
    return %arg0, %c0_i32 : i32, i32
  }
  func.func @transform_1(%arg0: i32) -> (i32, i32) {
    %c0_i32 = arith.constant 0 : i32
    %c0_i32_0 = arith.constant 0 : i32
    %c0_i32_1 = arith.constant 0 : i32
    return %c0_i32, %c0_i32_0 : i32, i32
  }
  func.func @transform_2(%arg0: i32) -> (i32, i32) {
    %c0_i32 = arith.constant 0 : i32
    %c0_i32_0 = arith.constant 0 : i32
    %c0_i32_1 = arith.constant 0 : i32
    return %c0_i32, %c0_i32_0 : i32, i32
  }
  func.func @transform_3(%arg0: i32) -> (i32, i32) {
    %c0_i32 = arith.constant 0 : i32
    %c0_i32_0 = arith.constant 0 : i32
    return %arg0, %c0_i32 : i32, i32
  }
  func.func @transform_4(%arg0: i32) -> (i32, i32) {
    %c0_i32 = arith.constant 0 : i32
    %c0_i32_0 = arith.constant 0 : i32
    return %arg0, %c0_i32 : i32, i32
  }
}

</mosaic_0001>

<bundles_post_ra>
// kernel: tpu_custom_call.1
= control target key start
LH: loop header
LB: loop body
LE: loop exit
PB: predicated region body
PF: predicated region fallthrough
CT: control target
= control target key end

     0   :  { %10 = vsyncpa [#allocation3], 0  ;;  %s536_s0 = inlined_call_operand.hbm [shape: bf16[8,128], index: 0, kind: input, shape index: {}]   ;;  %s537_s1 = inlined_call_operand.hbm [shape: bf16[128,128], index: 1, kind: input, shape index: {}]   ;;  %s538_s2 = inlined_call_operand.hbm [shape: bf16[128,128], index: 2, kind: input, shape index: {}]   ;;  %s539_s3 = inlined_call_operand.hbm [shape: f32[8,128], index: 3, kind: output, shape index: {0}]   ;;  %s540_s4 = inlined_call_operand.hbm [shape: f32[8,128], index: 4, kind: output, shape index: {1}]  }
   0x1   :  { %11 = vsyncpa [#allocation6], 0 }
   0x2   :  { %12 = vsyncpa [#allocation4], 0  ;;  %s29_s17 = sshll.u32 %s537_s1, 4  ;;  %s30_s17 = int_to_ptr.hbm [resolvable:$true] %s29_s17 }
   0x3   :  { %13 = vsyncpa [#allocation10], 0  ;;  %s489_s18 = smov [#allocation5]   ;;  %s19_s22 = sshll.u32 %s536_s0, 4  ;;  %s20_s22 = int_to_ptr.hbm [resolvable:$true] %s19_s22 }
   0x4   :  { %s31_s19 = sshll.u32 %s489_s18, 4  ;;  %s490_s23 = smov 64   ;;  %s32_s19 = int_to_ptr.vmem [resolvable:$true] %s31_s19 }
   0x5   :  { %s491_s24 = smov 4   ;;  %s492_s25 = smov [#allocation2]  }
   0x6   :  { %37 = dma.hbm_to_vmem [thread:$0]  %s30_s17, 1024, %s32_s19, [#allocation6], %s490_s23, %s490_s23, %s491_s24  }
   0x7   :  { %s21_s26 = sshll.u32 %s492_s25, 4  ;;  %s42_s29 = sshll.u32 %s538_s2, 4  ;;  %s22_s26 = int_to_ptr.vmem [resolvable:$true] %s21_s26  ;;  %s43_s29 = int_to_ptr.hbm [resolvable:$true] %s42_s29 }
   0x8   :  { %24 = dma.hbm_to_vmem [thread:$0]  %s20_s22, 64, %s22_s26, [#allocation3]  }
   0x9   :  { %s493_s1 = smov [#allocation7]  }
   0xa   :  { %s44_s30 = sshll.u32 %s493_s1, 4  ;;  %s45_s30 = int_to_ptr.vmem [resolvable:$true] %s44_s30 }
   0xb   :  { %50 = dma.hbm_to_vmem [thread:$0]  %s43_s29, 1024, %s45_s30, [#allocation6], %s490_s23, %s490_s23, %s491_s24  }
   0xc   :  { %481 = dma.done.wait [#allocation3], 64  }
   0xd   :  { %482 = vsyncadd [#allocation3], 4294967232 }
   0xe   :  { %483 = dma.done.wait [#allocation6], 2048  }
   0xf   :  { %484 = vsyncadd [#allocation6], 4294965248  ;;  %v341_v0 = vld [vmem:[#allocation5 + $0x38] sm:$0xff]  ;;  %v340_v1 = vld [vmem:[#allocation5 + $0x30] sm:$0xff]  ;;  %v221_v21 = vlaneseq  ;;  %s494_s0 = smov [#allocation9]   ;;  %s254_s7 = sshll.u32 %s540_s4, 4  ;;  %s255_s7 = int_to_ptr.hbm [resolvable:$true] %s254_s7 }
  0x10   :  { %128 = vmatpush.bf16.msra.mxu0 %v341_v0  ;;  %v349_v2 = vld [vmem:[#allocation7 + $0x38] sm:$0xff]  ;;  %v348_v3 = vld [vmem:[#allocation7 + $0x30] sm:$0xff]  ;;  %v339_v4 = vld [vmem:[#allocation5 + $0x28] sm:$0xff]  ;;  %s252_s2 = sshll.u32 %s494_s0, 4  ;;  %s495_s8 = smov [#allocation8]   ;;  %s253_s2 = int_to_ptr.vmem [resolvable:$true] %s252_s2 }
  0x11   :  { %208 = vmatpush.bf16.msra.mxu1 %v349_v2  ;;  %v347_v5 = vld [vmem:[#allocation7 + $0x28] sm:$0xff]  ;;  %v338_v6 = vld [vmem:[#allocation5 + $0x20] sm:$0xff]  ;;  %v337_v8 = vld [vmem:[#allocation5 + $0x18] sm:$0xff]  ;;  %v222_v22 = vand.u32 127, %v221_v21  ;;  %s241_s9 = sshll.u32 %s495_s8, 4  ;;  %s243_s12 = sshll.u32 %s539_s3, 4  ;;  %s242_s9 = int_to_ptr.vmem [resolvable:$true] %s241_s9  ;;  %s244_s12 = int_to_ptr.hbm [resolvable:$true] %s243_s12 }
  0x12   :  { %v346_v7 = vld [vmem:[#allocation7 + $0x20] sm:$0xff]  ;;  %v345_v9 = vld [vmem:[#allocation7 + $0x18] sm:$0xff]  ;;  %v336_v10 = vld [vmem:[#allocation5 + $0x10] sm:$0xff] }
  0x13   :  { %v344_v11 = vld [vmem:[#allocation7 + $0x10] sm:$0xff]  ;;  %v335_v12 = vld [vmem:[#allocation5 + $0x8] sm:$0xff]  ;;  %v334_v14 = vld [vmem:[#allocation5] sm:$0xff]  ;;  %vm223_vm0 = vcmp.lt.s32.totalorder %v222_v22, 4 }
  0x14   :  { %129 = vmatpush.bf16.msra.mxu0 %v340_v1  ;;  %v343_v13 = vld [vmem:[#allocation7 + $0x8] sm:$0xff]  ;;  %v63_v15 = vld [vmem:[#allocation2] sm:$0xf]  ;;  %v342_v16 = vld [vmem:[#allocation7] sm:$0xff] }
  0x15   :  { %209 = vmatpush.bf16.msra.mxu1 %v348_v3 }
  0x18   :  { %130 = vmatpush.bf16.msra.mxu0 %v339_v4 }
  0x19   :  { %210 = vmatpush.bf16.msra.mxu1 %v347_v5 }
  0x1c   :  { %131 = vmatpush.bf16.msra.mxu0 %v338_v6 }
  0x1d   :  { %211 = vmatpush.bf16.msra.mxu1 %v346_v7 }
  0x20   :  { %132 = vmatpush.bf16.msra.mxu0 %v337_v8 }
  0x21   :  { %212 = vmatpush.bf16.msra.mxu1 %v345_v9 }
  0x24   :  { %133 = vmatpush.bf16.msra.mxu0 %v336_v10 }
  0x25   :  { %213 = vmatpush.bf16.msra.mxu1 %v344_v11 }
  0x28   :  { %134 = vmatpush.bf16.msra.mxu0 %v335_v12 }
  0x29   :  { %214 = vmatpush.bf16.msra.mxu1 %v343_v13 }
  0x2c   :  { %135 = vmatpush.bf16.msra.mxu0 %v334_v14 }
  0x2d   :  { %215 = vmatpush.bf16.msra.mxu1 %v342_v16 }
  0x2f   :  { %136 = vmatmul.bf16.vlgmr.msra.gmra.mxu0 %v63_v15 }
  0xac   :  { %v137_v17 = vpop.f32.mrf.mxu0 }
  0xad   :  { %v141_v18 = vmax.f32 %v137_v17, 0.0 }
  0xaf   :  { %142 = vst [vmem:[#allocation9] sm:$0xff] %v141_v18  ;;  %v143_v19 = vpack.c.bf16 %v141_v18, %v141_v18 }
  0xb0   :  { %257 = dma.vmem_to_hbm [thread:$0]  %s253_s2, 128, %s255_s7, [#allocation10]  }
  0xb1   :  { %216 = vmatmul.bf16.vlgmr.msra.gmra.mxu1 %v143_v19 }
  0xb4   :  { %v139_v20 = vpop.f32.mrf.mxu0 }
 0x12e   :  { %v217_v23 = vpop.f32.mrf.mxu1 }
 0x12f   :  { %v224_v24 = vsel %vm223_vm0, %v217_v23, -1e+30 }
 0x130   :  { %225 = vmax.xlane.f32.xlu0 %v224_v24 }
 0x136   :  { %v219_v25 = vpop.f32.mrf.mxu1 }
 0x1a3   :  { %v226_v26 = vpop.xlane.xlu0 %225 }
 0x1a4   :  { %v227_v27 = vsub.f32 %v224_v24, %v226_v26 }
 0x1a6   :  { %v228_v28 = vmul.f32 1.442695, %v227_v27 }
 0x1a8   :  { %357 = vpow2.f32 %v228_v28 }
 0x1ae   :  { %v358_v29 = vpop.eup %357 }
 0x1af   :  { %230 = vadd.xlane.f32.xlu0 %v358_v29 }
 0x222   :  { %v231_v30 = vpop.xlane.xlu0 %230 }
 0x223   :  { %359 = vlog2.f32 %v231_v30 }
 0x229   :  { %v360_v31 = vpop.eup %359 }
 0x22a   :  { %v233_v32 = vmul.f32 0.6931472, %v360_v31 }
 0x22c   :  { %v234_v33 = vsub.f32 %v227_v27, %v233_v32 }
 0x22e   :  { %235 = vst [vmem:[#allocation8] sm:$0xff] %v234_v33 }
 0x22f   :  { %246 = dma.vmem_to_hbm [thread:$0]  %s242_s9, 128, %s244_s12, [#allocation4]  }
 0x230   :  { %485 = dma.done.wait [#allocation4], 128  }
 0x231   :  { %486 = vsyncadd [#allocation4], 4294967168 }
 0x232   :  { %487 = dma.done.wait [#allocation10], 128  }
 0x233   :  { %488 = vsyncadd [#allocation10], 4294967168 }
 0x234   :  { %266 = vsyncpa [#allocation3], 1 }
 0x235   :  { %267 = vsyncpa [#allocation6], 1 }
 0x236   :  { %268 = vsyncpa [#allocation4], 1 }
 0x237   :  { %269 = vsyncpa [#allocation10], 1 }

</bundles_post_ra>
